<compile_context>
chip_gen: v6e
topology: v6e:2x2x1
jax: 0.10.0
libtpu: 0.0.40
codegen_flags: <defaults>
</compile_context>

<pallas_src>
import jax
import jax.numpy as jnp
import numpy as np
from jax import lax
from jax.experimental import pallas as pl
from jax.experimental.pallas import tpu as pltpu


def _round_up(a, b):
    return ((a + b - 1) // b) * b


def _fused_ensemble_kernel(x_ref, w1_ref, b1_ref, w2_ref, b2_ref, w3_ref,
                           out_ref):
    """One batch tile; batch rows live on the lane axis of every activation.

    x_ref  : (TB, D)     input tile, natural row-major layout (bf16)
    w1_ref : (MHp, D)    stacked first-layer weights, sublane-padded (bf16)
    b1_ref : (MHp, 1)    stacked first-layer biases (f32; bias row = 1.0)
    w2_ref : (MHp, MHp)  block-diagonal second-layer weights (bias diag = 1)
    b2_ref : (MHp, 1)    stacked second-layer biases (f32; pad rows = 0)
    w3_ref : (MHp, 1)    third-layer weights * 1/M (f32; bias row = mean(b3))
    out_ref: (1, TB)     ensemble-mean prediction row (lane-dense, f32)
    """
    # Layer 1 for all M models at once, contracting over D on the MXU with a
    # transposed RHS: (MHp, D) x (TB, D) -> (MHp, TB).  No HBM/XLU transpose
    # of x anywhere.
    h1 = lax.dot_general(w1_ref[...], x_ref[...],
                         dimension_numbers=(((1,), (1,)), ((), ())),
                         preferred_element_type=jnp.float32)
    h1 = jnp.maximum(h1 + b1_ref[...], 0.0)                     # f32 VPU

    # Layer 2 via block-diagonal weights: (MHp, MHp) @ (MHp, TB) -> (MHp, TB)
    h2 = jnp.dot(w2_ref[...], h1.astype(w2_ref.dtype),
                 preferred_element_type=jnp.float32)
    h2 = jnp.maximum(h2 + b2_ref[...], 0.0)                     # f32 VPU

    # Layer 3 + ensemble mean + mean(b3): width-1 output -> VPU multiply +
    # sublane (XLU) reduction instead of an output-width-1 MXU matmul.
    # w3 carries the 1/M factor; the "always-on" padded row carries mean(b3).
    y = jnp.sum(h2 * w3_ref[...], axis=0, keepdims=True)        # (1, TB) f32
    out_ref[...] = y.astype(out_ref.dtype)


def _pack_params(params, compute_dtype):
    """Pack per-model torch-layout weights into the fused kernel layout.

    The ensemble axis (M*H rows) is zero-padded up to a multiple of 8
    sublanes, with at least one spare row reserved to carry mean(b3):
        b1[pad] = 1            -> h1[pad] = relu(1) = 1
        W2[pad, pad] = 1, b2[pad] = 0 -> h2[pad] = relu(1) = 1
        w3[pad] = mean(b3)     -> layer-3 sum picks up the mean bias exactly.
    All other padded entries are zero and contribute nothing.
    """
    W1, b1 = params["W1"], params["b1"]   # (M, H, D), (M, H)
    W2, b2 = params["W2"], params["b2"]   # (M, H, H), (M, H)
    W3, b3 = params["W3"], params["b3"]   # (M, 1, H), (M, 1)
    M, H, D = W1.shape
    MH = M * H
    MHp = _round_up(MH + 1, 8)            # >= 1 spare row for the b3 trick
    bias_row = MH                         # the "always-on" row

    W1p = jnp.zeros((MHp, D), jnp.float32).at[:MH].set(W1.reshape(MH, D))
    b1p = jnp.zeros((MHp, 1), jnp.float32).at[:MH].set(b1.reshape(MH, 1))
    b1p = b1p.at[bias_row, 0].set(1.0)

    W2p = jnp.zeros((MHp, MHp), jnp.float32)
    for m in range(M):                                  # static, M is tiny
        W2p = W2p.at[m * H:(m + 1) * H, m * H:(m + 1) * H].set(W2[m])
    W2p = W2p.at[bias_row, bias_row].set(1.0)
    b2p = jnp.zeros((MHp, 1), jnp.float32).at[:MH].set(b2.reshape(MH, 1))

    w3p = jnp.zeros((MHp, 1), jnp.float32)
    w3p = w3p.at[:MH].set(W3.reshape(MH, 1) / float(M))  # 1/M folded in
    w3p = w3p.at[bias_row, 0].set(jnp.mean(b3))          # pre-averaged bias

    return dict(W1p=W1p.astype(compute_dtype), b1p=b1p,
                W2p=W2p.astype(compute_dtype), b2p=b2p, w3p=w3p)


def _choose_batch_tile(N):
    """Large lane-dense tiles amortize the ~0.35 us/grid-step overhead; keep
    >= 2 grid steps when N allows so both v7x TensorCores get work."""
    MAX_TILE = 2048
    if N >= 2 * MAX_TILE:
        return MAX_TILE
    approx = _round_up(max(1, -(-N // 4)), 128)   # aim for ~4 grid steps
    return max(128, min(approx, MAX_TILE))


def enrichment_feedforward_forward(x, params, *, batch_tile=None,
                                   compute_dtype=jnp.bfloat16):
    """Pallas implementation of EnrichmentFeedForward.forward.

    x:       (N, input_sz) flattened one-hot sequences (float32 or bfloat16;
             pass bf16 to skip the wrapper-side cast — one-hot values are
             exact in bf16).
    params:  dict with W1 (M,H,D), b1 (M,H), W2 (M,H,H), b2 (M,H),
             W3 (M,1,H), b3 (M,1)   -- torch.nn.Linear (out, in) layout.
    returns: (N,) float32 -- mean over the M ensemble members.
    """
    N, D = x.shape
    M, H, Din = params["W1"].shape
    assert Din == D

    packed = _pack_params(params, compute_dtype)

    if batch_tile is None:
        batch_tile = _choose_batch_tile(N)
    assert batch_tile % 128 == 0, "batch_tile must be a multiple of 128 lanes"

    # Pad the batch up to a tile multiple with zero rows (sliced off below)
    # instead of shrinking the tile: per-step overhead dominates small tiles.
    Np = _round_up(N, batch_tile)
    xc = x if x.dtype == compute_dtype else x.astype(compute_dtype)
    if Np != N:
        xc = jnp.pad(xc, ((0, Np - N), (0, 0)))
    grid = (Np // batch_tile,)

    def resident(a):
        # Constant index map -> weights stay VMEM-resident, no per-step DMA.
        return pl.BlockSpec(a.shape, lambda i: (0,) * a.ndim)

    out = pl.pallas_call(
        _fused_ensemble_kernel,
        out_shape=jax.ShapeDtypeStruct((1, Np), jnp.float32),
        grid_spec=pltpu.PrefetchScalarGridSpec(
            num_scalar_prefetch=0,
            grid=grid,
            in_specs=[
                # Natural (N, D) layout: D = 32 is the full minor dim, so the
                # (8, 128) rule is satisfied and the per-step DMA is one
                # contiguous slab of rows.
                pl.BlockSpec((batch_tile, D), lambda i: (i, 0)),
                resident(packed["W1p"]),
                resident(packed["b1p"]),
                resident(packed["W2p"]),
                resident(packed["b2p"]),
                resident(packed["w3p"]),
            ],
            out_specs=pl.BlockSpec((1, batch_tile), lambda i: (0, i)),
        ),
        compiler_params=pltpu.CompilerParams(
            dimension_semantics=("parallel",)),
    )(xc, packed["W1p"], packed["b1p"], packed["W2p"], packed["b2p"],
      packed["w3p"])
    return out[0, :N]


def init_params(key, input_sz, n_hidden, n_model):
    """Deterministic init matching torch.nn.Linear's U(-1/sqrt(fan_in), ...).

    Weights are kept in torch layout (out_features, in_features) per model.
    """
    ks = jax.random.split(key, 6)

    def u(k, shape, fan_in):
        bound = 1.0 / np.sqrt(fan_in)
        return jax.random.uniform(k, shape, jnp.float32, -bound, bound)

    return {
        "W1": u(ks[0], (n_model, n_hidden, input_sz), input_sz),
        "b1": u(ks[1], (n_model, n_hidden), input_sz),
        "W2": u(ks[2], (n_model, n_hidden, n_hidden), n_hidden),
        "b2": u(ks[3], (n_model, n_hidden), n_hidden),
        "W3": u(ks[4], (n_model, 1, n_hidden), n_hidden),
        "b3": u(ks[5], (n_model, 1), n_hidden),
    }


def reference_forward(x, params):
    """Pure-JAX f32 reference of the PyTorch forward (correctness check)."""
    M = params["W1"].shape[0]
    preds = []
    for m in range(M):
        h1 = jnp.maximum(x @ params["W1"][m].T + params["b1"][m], 0.0)
        h2 = jnp.maximum(h1 @ params["W2"][m].T + params["b2"][m], 0.0)
        y = h2 @ params["W3"][m].T + params["b3"][m]          # (N, 1)
        preds.append(y)
    pred_nxm = jnp.concatenate(preds, axis=1)                 # (N, M)
    return jnp.mean(pred_nxm, axis=1)                         # (N,)


# TODO(synk): fit()/Adam training loop, save/load and str2onehot preprocessing
# are host-side / training-only and are not part of the forward-pass kernel.

if __name__ == "__main__":
    # Shapes consistent with the module: seq_len=8, 4-char alphabet,
    # n_hidden=10, n_model=3  =>  input_sz = 32.  N=256 -> two 128-lane grid
    # steps (pipelined x DMA, both v7x TensorCores busy).
    seq_len, alphabet_len = 8, 4
    n_hidden, n_model = 10, 3
    N = 256
    input_sz = seq_len * alphabet_len

    key = jax.random.PRNGKey(0)
    k_x, k_p = jax.random.split(key)

    # Flattened one-hot sequences (exactly representable in bf16), supplied to
    # the kernel already in bf16 so the wrapper adds no extra cast pass.
    tokens = jax.random.randint(k_x, (N, seq_len), 0, alphabet_len)
    x_f32 = jax.nn.one_hot(tokens, alphabet_len,
                           dtype=jnp.float32).reshape(N, input_sz)
    x_bf16 = x_f32.astype(jnp.bfloat16)

    params = init_params(k_p, input_sz, n_hidden, n_model)

    out = enrichment_feedforward_forward(x_bf16, params)
    out = jax.block_until_ready(out)

    ref = jax.block_until_ready(reference_forward(x_f32, params))
    assert out.shape == (N,)
    # bf16 MXU operands -> loosened tolerance vs. the pure-f32 reference.
    np.testing.assert_allclose(np.asarray(out), np.asarray(ref),
                               rtol=2e-2, atol=2e-2)
    print("KERNEL_OK")
</pallas_src>

<mosaic_0001>
module attributes {stable_mosaic.version = 11 : i64} {
  func.func @_fused_ensemble_kernel(%arg0: i32, %arg1: memref<128x32xbf16, #tpu.memory_space<vmem>>, %arg2: memref<32x32xbf16, #tpu.memory_space<vmem>>, %arg3: memref<32x1xf32, #tpu.memory_space<vmem>>, %arg4: memref<32x32xbf16, #tpu.memory_space<vmem>>, %arg5: memref<32x1xf32, #tpu.memory_space<vmem>>, %arg6: memref<32x1xf32, #tpu.memory_space<vmem>>, %arg7: memref<1x128xf32, #tpu.memory_space<vmem>>) attributes {dimension_semantics = [#tpu.dimension_semantics<parallel>], iteration_bounds = array<i64: 2>, scalar_prefetch = 0 : i64, scratch_operands = 0 : i64, tpu.core_type = #tpu.core_type<tc>, window_params = [{transform_indices = @transform_0, window_bounds = array<i64: 128, 32>}, {pipeline_mode = #tpu.pipeline_mode<synchronous>, transform_indices = @transform_1, window_bounds = array<i64: 32, 32>}, {pipeline_mode = #tpu.pipeline_mode<synchronous>, transform_indices = @transform_2, window_bounds = array<i64: 32, 1>}, {pipeline_mode = #tpu.pipeline_mode<synchronous>, transform_indices = @transform_3, window_bounds = array<i64: 32, 32>}, {pipeline_mode = #tpu.pipeline_mode<synchronous>, transform_indices = @transform_4, window_bounds = array<i64: 32, 1>}, {pipeline_mode = #tpu.pipeline_mode<synchronous>, transform_indices = @transform_5, window_bounds = array<i64: 32, 1>}, {transform_indices = @transform_6, window_bounds = array<i64: 1, 128>}]} {
    %c0 = arith.constant 0 : index
    %c0_0 = arith.constant 0 : index
    %0 = vector.load %arg2[%c0, %c0_0] : memref<32x32xbf16, #tpu.memory_space<vmem>>, vector<32x32xbf16>
    %c0_1 = arith.constant 0 : index
    %c0_2 = arith.constant 0 : index
    %1 = vector.load %arg1[%c0_1, %c0_2] : memref<128x32xbf16, #tpu.memory_space<vmem>>, vector<128x32xbf16>
    %cst = arith.constant dense<0.000000e+00> : vector<32x128xf32>
    %2 = tpu.matmul %0, %1, %cst {dimension_numbers = #tpu.dot_dimension_numbers<[1], [1], [0], [0], [0, 0, 1, 0], [], []>} : vector<32x32xbf16>, vector<128x32xbf16>, vector<32x128xf32> -> vector<32x128xf32>
    %c0_3 = arith.constant 0 : index
    %c0_4 = arith.constant 0 : index
    %3 = vector.load %arg3[%c0_3, %c0_4] : memref<32x1xf32, #tpu.memory_space<vmem>>, vector<32x1xf32>
    %4 = vector.broadcast %3 : vector<32x1xf32> to vector<32x128xf32>
    %5 = arith.addf %2, %4 : vector<32x128xf32>
    %cst_5 = arith.constant 0.000000e+00 : f32
    %6 = vector.broadcast %cst_5 : f32 to vector<32x128xf32>
    %7 = arith.maximumf %5, %6 : vector<32x128xf32>
    %c0_6 = arith.constant 0 : index
    %c0_7 = arith.constant 0 : index
    %8 = vector.load %arg4[%c0_6, %c0_7] : memref<32x32xbf16, #tpu.memory_space<vmem>>, vector<32x32xbf16>
    %9 = arith.truncf %7 : vector<32x128xf32> to vector<32x128xbf16>
    %cst_8 = arith.constant dense<0.000000e+00> : vector<32x128xf32>
    %10 = tpu.matmul %8, %9, %cst_8 {dimension_numbers = #tpu.dot_dimension_numbers<[1], [0], [0], [1], [0, 0, 1, 1], [], []>} : vector<32x32xbf16>, vector<32x128xbf16>, vector<32x128xf32> -> vector<32x128xf32>
    %c0_9 = arith.constant 0 : index
    %c0_10 = arith.constant 0 : index
    %11 = vector.load %arg5[%c0_9, %c0_10] : memref<32x1xf32, #tpu.memory_space<vmem>>, vector<32x1xf32>
    %12 = vector.broadcast %11 : vector<32x1xf32> to vector<32x128xf32>
    %13 = arith.addf %10, %12 : vector<32x128xf32>
    %cst_11 = arith.constant 0.000000e+00 : f32
    %14 = vector.broadcast %cst_11 : f32 to vector<32x128xf32>
    %15 = arith.maximumf %13, %14 : vector<32x128xf32>
    %c0_12 = arith.constant 0 : index
    %c0_13 = arith.constant 0 : index
    %16 = vector.load %arg6[%c0_12, %c0_13] : memref<32x1xf32, #tpu.memory_space<vmem>>, vector<32x1xf32>
    %17 = vector.broadcast %16 : vector<32x1xf32> to vector<32x128xf32>
    %18 = arith.mulf %15, %17 : vector<32x128xf32>
    %cst_14 = arith.constant dense<0.000000e+00> : vector<128xf32>
    %19 = vector.multi_reduction <add>, %18, %cst_14 [0] : vector<32x128xf32> to vector<128xf32>
    %20 = vector.shape_cast %19 : vector<128xf32> to vector<1x128xf32>
    %c0_15 = arith.constant 0 : index
    %c0_16 = arith.constant 0 : index
    %21 = vector.load %arg7[%c0_15, %c0_16] : memref<1x128xf32, #tpu.memory_space<vmem>>, vector<1x128xf32>
    tpu.vector_store %arg7[%c0_15, %c0_16], %20 {strides = array<i32>} : memref<1x128xf32, #tpu.memory_space<vmem>>, vector<1x128xf32>,
    return
  }
  func.func @transform_0(%arg0: i32) -> (i32, i32) {
    %c0_i32 = arith.constant 0 : i32
    %c0_i32_0 = arith.constant 0 : i32
    return %arg0, %c0_i32 : i32, i32
  }
  func.func @transform_1(%arg0: i32) -> (i32, i32) {
    %c0_i32 = arith.constant 0 : i32
    %c0_i32_0 = arith.constant 0 : i32
    %c0_i32_1 = arith.constant 0 : i32
    return %c0_i32, %c0_i32_0 : i32, i32
  }
  func.func @transform_2(%arg0: i32) -> (i32, i32) {
    %c0_i32 = arith.constant 0 : i32
    %c0_i32_0 = arith.constant 0 : i32
    %c0_i32_1 = arith.constant 0 : i32
    return %c0_i32, %c0_i32_0 : i32, i32
  }
  func.func @transform_3(%arg0: i32) -> (i32, i32) {
    %c0_i32 = arith.constant 0 : i32
    %c0_i32_0 = arith.constant 0 : i32
    %c0_i32_1 = arith.constant 0 : i32
    return %c0_i32, %c0_i32_0 : i32, i32
  }
  func.func @transform_4(%arg0: i32) -> (i32, i32) {
    %c0_i32 = arith.constant 0 : i32
    %c0_i32_0 = arith.constant 0 : i32
    %c0_i32_1 = arith.constant 0 : i32
    return %c0_i32, %c0_i32_0 : i32, i32
  }
  func.func @transform_5(%arg0: i32) -> (i32, i32) {
    %c0_i32 = arith.constant 0 : i32
    %c0_i32_0 = arith.constant 0 : i32
    %c0_i32_1 = arith.constant 0 : i32
    return %c0_i32, %c0_i32_0 : i32, i32
  }
  func.func @transform_6(%arg0: i32) -> (i32, i32) {
    %c0_i32 = arith.constant 0 : i32
    %c0_i32_0 = arith.constant 0 : i32
    return %c0_i32, %arg0 : i32, i32
  }
}

</mosaic_0001>

<bundles_post_ra>
// kernel: tpu_custom_call.1
= control target key start
LH: loop header
LB: loop body
LE: loop exit
PB: predicated region body
PF: predicated region fallthrough
CT: control target
= control target key end

     0   :  { %11 = vsyncpa [#allocation3], 0  ;;  %s1027_s0 = inlined_call_operand.vmem [shape: bf16[256,32], index: 0, kind: input, shape index: {}]   ;;  %s1028_s1 = inlined_call_operand.vmem [shape: bf16[32,32], index: 1, kind: input, shape index: {}]   ;;  %s1029_s2 = inlined_call_operand.vmem [shape: f32[32,1], index: 2, kind: input, shape index: {}]   ;;  %s1030_s3 = inlined_call_operand.vmem [shape: bf16[32,32], index: 3, kind: input, shape index: {}]   ;;  %s1031_s4 = inlined_call_operand.vmem [shape: f32[32,1], index: 4, kind: input, shape index: {}]   ;;  %s1032_s5 = inlined_call_operand.vmem [shape: f32[32,1], index: 5, kind: input, shape index: {}]   ;;  %s1033_s6 = inlined_call_operand.hbm [shape: f32[1,256], index: 6, kind: output, shape index: {}]  }
   0x1   :  { %13 = vsyncpa [#allocation3 + $0x1], 0  ;;  %s863_s21 = smov 0   ;;  %s865_s22 = smov 0  }
   0x2   :  { %s867_s23 = smov 0   ;;  %s869_s24 = smov 0  }
   0x3 LB: > { %s634_s25 = sadd.s32 4294967295, %s824_s24   ;;  %s635_s26 = sadd.s32 4294967294, %s824_s24   ;;  %s824_s24 = sphi %s869_s24, %s1039_s24   ;;  %s820_s23 = sphi %s867_s23, %s1038_s23   ;;  %s816_s22 = sphi %s865_s22, %s1037_s22   ;;  %s812_s21 = sphi %s863_s21, %s1036_s21  }
   0x4   : > { %s886_s27 = sadd.s32 1, %s824_s24   ;;  %s157_s28 = sadd.s32 1, %s820_s23 }
   0x5   : > { %s154_s29 = ssub.s32 %s824_s24, %s886_s27  ;;  %p167_p0 = scmp.ne.s32.totalorder %s820_s23, %s816_s22 }
   0x6   : > { %p155_p1 = scmp.eq.s32.totalorder %s154_s29, 0  ;;  %p168_p2 = scmp.eq.s32.totalorder %s634_s25, 1 }
   0x7   : > { %p173_p3 = scmp.ne.s32.totalorder %s816_s22, %s812_s21  ;;  %p174_p4 = scmp.eq.s32.totalorder %s635_s26, 1 }
   0x8   : > { %s896_s30 = scalar_select %p155_p1, %s820_s23, %s157_s28  }
   0x9   : > { %p898_p5 = por %p168_p2, %p167_p0  ;;  %p902_p6 = por %p174_p4, %p173_p3 }
   0xa   : > { %p638_p7 = scmp.ge.s32.totalorder %s824_s24, 1  ;;  %p216_p8 = scmp.lt.s32.totalorder %s824_s24, 3 }
   0xc   : > { %p217_p9 = pnand %p638_p7, %p216_p8 }
   0xd   : > { %s908_s9 = sshll.u32 (!%p217_p9), %s634_s25, 4  ;;  %s827_s11 = smov (!%p217_p9), [#allocation2]  }
   0xe   : > { %220 = sbr.rel (%p217_p9) target bundleno = 535 (0x217), region = 44  ;;  %p246_p10 = scmp.lt.s32.totalorder (!%p217_p9), %s908_s9, 31 }
   0xf   : > { %s578_s28 = scalar_lea.hbm (!%p217_p9), %s1033_s6, %s908_s9  ;;  %s768_s12 = sshll.u32 (!%p217_p9), %s827_s11, 4  ;;  %s769_s12 = int_to_ptr.vmem [resolvable:$false] %s768_s12 }
  0x10   : > { %s770_s13 = scalar_lea.vmem (!%p217_p9), %s769_s12, 32 }
  0x13   : > { %v760_v0 = vld [vmem:[%s1028_s1] sm:$0xff]   ;;  %vm346_vm0 = vcmask 261120   ;;  %v274_v1 = vld [vmem:[%s1029_s2 + $0x10] sm:$0xff]  ;;  %s247_s14 = scalar_select %p246_p10, %s908_s9, 31  ;;  %v826_v2 = vmov 0   ;;  %v275_v4 = vld [vmem:[%s1029_s2 + $0x18] sm:$0xff] }
  0x14   : > { %690 = vmatprep.mubr.msk.bf16.mxu0 %vm346_vm0, %v760_v0  ;;  %750 = vset.pattern.permute.xlu0 %v826_v2  ;;  %v272_v3 = vld [vmem:[%s1029_s2] sm:$0xff]  ;;  %v273_v5 = vld [vmem:[%s1029_s2 + $0x8] sm:$0xff]  ;;  %v438_v11 = vld [vmem:[%s1031_s4 + $0x10] sm:$0xff] }
  0x15   : > { %288 = vperm.xlu0 %750, %v274_v1   ;;  %751 = vset.pattern.permute.xlu1 %v826_v2  ;;  %s640_s17 = sshll.u32 %s247_s14, 2  ;;  %v436_v9 = vld [vmem:[%s1031_s4] sm:$0xff]  ;;  %v437_v10 = vld [vmem:[%s1031_s4 + $0x8] sm:$0xff]  ;;  %v439_v12 = vld [vmem:[%s1031_s4 + $0x18] sm:$0xff] }
  0x16   : > { %278 = vperm.xlu1 %751, %v272_v3   ;;  %s928_s26 = scalar_lea.vmem %s1027_s0, %s640_s17  ;;  %v529_v15 = vld [vmem:[%s1032_s5] sm:$0xff]  ;;  %v530_v16 = vld [vmem:[%s1032_s5 + $0x8] sm:$0xff]  ;;  %v531_v17 = vld [vmem:[%s1032_s5 + $0x10] sm:$0xff]  ;;  %s243_s17 = sand.u32 1, %s816_s22  }
  0x17   : > { %v752_v6 = vld [vmem:[%s928_s26 + $0x38] sm:$0xff]   ;;  %v753_v7 = vld [vmem:[%s928_s26 + $0x30] sm:$0xff]   ;;  %v754_v14 = vld [vmem:[%s928_s26 + $0x28] sm:$0xff]   ;;  %s244_s18 = scalar_lea.vmem [#allocation2], %s243_s17  ;;  %s568_s29 = scalar_lea.sflag [#allocation3], %s243_s17 }
  0x18   : > { %702 = vmatprep.subr.msk.bf16.mxu0 %vm346_vm0, %v752_v6  ;;  %v375_v8 = vsel %vm346_vm0, %v752_v6, 0  ;;  %v372_v13 = vsel %vm346_vm0, %v753_v7, 0  ;;  %v532_v18 = vld [vmem:[%s1032_s5 + $0x18] sm:$0xff]  ;;  %v369_v19 = vsel %vm346_vm0, %v754_v14, 0  ;;  %v755_v20 = vld [vmem:[%s928_s26 + $0x20] sm:$0xff]   ;;  %v757_v24 = vld [vmem:[%s928_s26 + $0x10] sm:$0xff]  }
  0x19   : > { %293 = vperm.xlu0 %750, %v275_v4   ;;  %675 = vmatpush3.bf16.xpose.msra.mxu0 %v375_v8  ;;  %v366_v21 = vsel %vm346_vm0, %v755_v20, 0  ;;  %v756_v22 = vld [vmem:[%s928_s26 + $0x18] sm:$0xff]   ;;  %v360_v25 = vsel %vm346_vm0, %v757_v24, 0  ;;  %v758_v26 = vld [vmem:[%s928_s26 + $0x8] sm:$0xff]   ;;  %v759_v28 = vld [vmem:[%s928_s26] sm:$0xff]   ;;  %s580_s19 = sshll.u32 %s244_s18, 4  ;;  %s581_s19 = int_to_ptr.vmem [resolvable:$true] %s580_s19 }
  0x1a   : > { %283 = vperm.xlu1 %751, %v273_v5   ;;  %703 = vmatprep.subr.msk.bf16.mxu0 %vm346_vm0, %v753_v7  ;;  %v363_v23 = vsel %vm346_vm0, %v756_v22, 0  ;;  %v357_v27 = vsel %vm346_vm0, %v758_v26, 0  ;;  %v354_v29 = vsel %vm346_vm0, %v759_v28, 0  ;;  %v761_v30 = vld [vmem:[%s1028_s1 + $0x8] sm:$0xff]   ;;  %v762_v31 = vld [vmem:[%s1030_s3] sm:$0xff]   ;;  %s764_s10 = scalar_lea.vmem %s581_s19, 16  ;;  %p771_p0 = scmp.lt.s32.totalorder %s581_s19, %s769_s12 }
  0x1b   : > { %698 = vmatprep.mubr.msk.bf16.mxu1 %vm346_vm0, %v762_v31  ;;  %v763_v50 = vld [vmem:[%s1030_s3 + $0x8] sm:$0xff]   ;;  %p765_p11 = scmp.ne.s32.totalorder %s581_s19, %s764_s10  ;;  %p772_p1 = scmp.lt.s32.totalorder %s770_s13, %s764_s10 }
  0x1d   : > { %442 = vperm.xlu0 %750, %v436_v9   ;;  %p766_p12 = pnand %p765_p11, %p898_p5  ;;  %p773_p2 = por %p772_p1, %p771_p0 }
  0x1e   : > { %447 = vperm.xlu1 %751, %v437_v10  }
  0x1f   : > { %p767_p13 = pneg %p766_p12 }
  0x21   : > { %452 = vperm.xlu0 %750, %v438_v11   ;;  %677 = vmatpush3.bf16.xpose.msra.mxu0 %v372_v13  ;;  %p774_p3 = pnand %p773_p2, %p767_p13 }
  0x22   : > { %457 = vperm.xlu1 %751, %v439_v12   ;;  %704 = vmatprep.subr.msk.bf16.mxu0 %vm346_vm0, %v754_v14 }
  0x25   : > { %535 = vperm.xlu0 %750, %v529_v15  }
  0x26   : > { %540 = vperm.xlu1 %751, %v530_v16  }
  0x29   : > { %545 = vperm.xlu0 %750, %v531_v17   ;;  %679 = vmatpush3.bf16.xpose.msra.mxu0 %v369_v19 }
  0x2a   : > { %550 = vperm.xlu1 %751, %v532_v18   ;;  %705 = vmatprep.subr.msk.bf16.mxu0 %vm346_vm0, %v755_v20 }
  0x31   : > { %681 = vmatpush3.bf16.xpose.msra.mxu0 %v366_v21 }
  0x32   : > { %706 = vmatprep.subr.msk.bf16.mxu0 %vm346_vm0, %v756_v22 }
  0x39   : > { %683 = vmatpush3.bf16.xpose.msra.mxu0 %v363_v23 }
  0x3a   : > { %707 = vmatprep.subr.msk.bf16.mxu0 %vm346_vm0, %v757_v24 }
  0x41   : > { %685 = vmatpush3.bf16.xpose.msra.mxu0 %v360_v25 }
  0x42   : > { %708 = vmatprep.subr.msk.bf16.mxu0 %vm346_vm0, %v758_v26 }
  0x49   : > { %687 = vmatpush3.bf16.xpose.msra.mxu0 %v357_v27 }
  0x4a   : > { %709 = vmatprep.subr.msk.bf16.mxu0 %vm346_vm0, %v759_v28 }
  0x51   : > { %689 = vmatpush3.bf16.xpose.msra.mxu0 %v354_v29 }
  0x58   : > { %691 = vmatmul.mubr.msk.bf16.vlgmr.msra.gmra.mxu0 %vm346_vm0, %v761_v30 }
  0x90   : > { %v289_v32 = vpop.permute.xlu0 %288 }
  0x91   : > { %v279_v33 = vpop.permute.xlu1 %278 }
  0x94   : > { %v294_v37 = vpop.permute.xlu0 %293 }
  0x95   : > { %v284_v41 = vpop.permute.xlu1 %283 }
  0x98   : > { %v443_v51 = vpop.permute.xlu0 %442 }
  0x99   : > { %v448_v52 = vpop.permute.xlu1 %447 }
  0x9c   : > { %v453_v53 = vpop.permute.xlu0 %452 }
  0x9d   : > { %v458_v55 = vpop.permute.xlu1 %457 }
  0xa0   : > { %v536_v60 = vpop.permute.xlu0 %535 }
  0xa1   : > { %v541_v1 = vpop.permute.xlu1 %540 }
  0xa4   : > { %v546_v7 = vpop.permute.xlu0 %545 }
  0xa5   : > { %v551_v10 = vpop.permute.xlu1 %550 }
 0x118   : > { %v692_v34 = vpop.f32.mrf.mxu0 }
 0x119   : > { %v420_v36 = vadd.f32 %v692_v34, %v289_v32 }
 0x11a   : > { %v411_v35 = vpop.f32.mrf.mxu0 }
 0x11b   : > { %v412_v39 = vadd.f32 %v411_v35, %v279_v33  ;;  %v428_v43 = vmax.f32 %v420_v36, 0.0 }
 0x11c   : > { %v693_v38 = vpop.f32.mrf.mxu0 }
 0x11d   : > { %v423_v40 = vadd.f32 %v693_v38, %v294_v37  ;;  %v426_v46 = vmax.f32 %v412_v39, 0.0 }
 0x11e   : > { %v414_v42 = vpop.f32.mrf.mxu0 }
 0x11f   : > { %v429_v44 = vmax.f32 %v423_v40, 0.0  ;;  %v415_v45 = vadd.f32 %v414_v42, %v284_v41 }
 0x121   : > { %v427_v47 = vmax.f32 %v415_v45, 0.0  ;;  %v435_v48 = vpack.c.bf16 %v429_v44, %v428_v43 }
 0x123   : > { %v434_v49 = vpack.c.bf16 %v427_v47, %v426_v46  ;;  %694 = vmatprep.subr.bf16.mxu1 %v435_v48 }
 0x124   : > { %695 = vmatpush3.bf16.msra.mxu1 %v435_v48 }
 0x125   : > { %696 = vmatprep.subr.bf16.mxu1 %v434_v49 }
 0x128   : > { %697 = vmatpush3.bf16.msra.mxu1 %v434_v49 }
 0x12b   : > { %699 = vmatmul.mubr.msk.bf16.vlgmr.msra.gmra.mxu1 %vm346_vm0, %v763_v50 }
 0x1eb   : > { %v700_v54 = vpop.f32.mrf.mxu1 }
 0x1ec   : > { %v519_v59 = vadd.f32 %v700_v54, %v453_v53 }
 0x1ed   : > { %v510_v56 = vpop.f32.mrf.mxu1 }
 0x1ee   : > { %v511_v57 = vadd.f32 %v510_v56, %v443_v51  ;;  %v527_v2 = vmax.f32 %v519_v59, 0.0 }
 0x1ef   : > { %v701_v58 = vpop.f32.mrf.mxu1 }
 0x1f0   : > { %v525_v62 = vmax.f32 %v511_v57, 0.0  ;;  %v522_v63 = vadd.f32 %v701_v58, %v458_v55  ;;  %v555_v8 = vmul.f32 %v546_v7, %v527_v2 }
 0x1f1   : > { %v513_v61 = vpop.f32.mrf.mxu1 }
 0x1f2   : > { %v514_v0 = vadd.f32 %v513_v61, %v448_v52  ;;  %v553_v4 = vmul.f32 %v536_v60, %v525_v62  ;;  %v528_v5 = vmax.f32 %v522_v63, 0.0 }
 0x1f4   : > { %v526_v3 = vmax.f32 %v514_v0, 0.0  ;;  %v556_v11 = vmul.f32 %v551_v10, %v528_v5 }
 0x1f6   : > { %v554_v6 = vmul.f32 %v541_v1, %v526_v3 }
 0x1f8   : > { %v557_v9 = vadd.f32 %v554_v6, %v553_v4 }
 0x1fa   : > { %v558_v12 = vadd.f32 %v557_v9, %v555_v8 }
 0x1fc   : > { %v559_v13 = vadd.f32 %v558_v12, %v556_v11 }
 0x1fe   : > { %v560_v14 = vrot.slane %v559_v13, 4 }
 0x200   : > { %v561_v15 = vadd.f32 %v560_v14, %v559_v13 }
 0x202   : > { %v562_v16 = vrot.slane %v561_v15, 2 }
 0x204   : > { %v563_v17 = vadd.f32 %v562_v16, %v561_v15 }
 0x206   : > { %v564_v18 = vrot.slane %v563_v17, 1 }
 0x208   : > { %v565_v19 = vadd.f32 %v564_v18, %v563_v17 }
 0x20a   : > { %566 = vst [vmem:[%s244_s18] sm:$0x1] %v565_v19 }
 0x20b   : > { %777 = shalt.err (!%p774_p3)
}
 0x20c   : > { %s778_s14 = scalar_lea.hbm %s578_s28, 16  ;;  %s782_s26 = scalar_lea.hbm %s1033_s6, 32 }
 0x20d   : > { %p779_p4 = scmp.ne.s32.totalorder %s578_s28, %s778_s14  ;;  %p783_p9 = scmp.lt.s32.totalorder %s578_s28, %s1033_s6 }
 0x20e   : > { %p784_p10 = scmp.lt.s32.totalorder %s782_s26, %s778_s14 }
 0x20f   : > { %p780_p7 = pnand %p779_p4, %p898_p5 }
 0x210   : > { %p785_p11 = por %p784_p10, %p783_p9 }
 0x211   : > { %p781_p8 = pneg %p780_p7 }
 0x213   : > { %p786_p12 = pnand %p785_p11, %p781_p8 }
 0x215   : > { %789 = shalt.err (!%p786_p12)
}
 0x216   : > { %710 = dma.vmem_to_hbm [thread:$0]  (%p898_p5), %s581_s19, 16, %s578_s28, %s568_s29  }
 0x217 PF: > { %p716_p13 = scmp.ge.s32.totalorder %s824_s24, 2  ;;  %s592_s18 = sand.u32 1, %s812_s21  }
 0x218   : > { %s593_s20 = scalar_lea.sflag [#allocation3], %s592_s18 }
 0x219   : > { %p713_p0 = pnand %p716_p13, %p902_p6 }
 0x21b   : > { %p714_p1 = pneg %p713_p0 }
 0x21d   : > { %807 = dma.done.wait (%p714_p1), %s593_s20, 16  }
 0x21e   : > { %809 = vsyncadd (%p714_p1), %s593_s20, 4294967280  ;;  %p16_p2 = scmp.ge.s32.totalorder %s886_s27, 4   ;;  %s1036_s21 = smov %s816_s22 }
 0x21f   : > { %s1037_s22 = smov %s820_s23  ;;  %s1038_s23 = smov %s896_s30 }
 0x220   : > { %s1039_s24 = smov %s886_s27  ;;  %18 = sbr.rel (!%p16_p2) target bundleno = 3 (0x3), region = 79 }
 0x225   :  { %597 = vsyncpa [#allocation3], 1 }
 0x226   :  { %599 = vsyncpa [#allocation3 + $0x1], 1 }

</bundles_post_ra>
